<compile_context>
chip_gen: v7x
topology: tpu7x:2x2x1
jax: 0.10.0
libtpu: 0.0.40
codegen_flags: <defaults>
</compile_context>

<pallas_src>
import functools

import jax
import jax.numpy as jnp
import numpy as np
from jax import lax
from jax.experimental import pallas as pl
from jax.experimental.pallas import tpu as pltpu


def _gp_kernel(real_ref, fake_ref, alpha_ref, w1t_ref, w1_ref, b1_ref, w2_ref,
               out_ref, h_acc, sumsq,
               *, n_valid, nb, cb, hw, n_ctiles, loss_weight):
    i = pl.program_id(0)          # batch tile
    p = pl.program_id(1)          # 0 = forward (accumulate h), 1 = backward
    c = pl.program_id(2)          # channel tile

    # ------------- phase 0: h += interp @ W1t  (this channel tile) ----------
    @pl.when(p == 0)
    def _forward():
        @pl.when(c == 0)
        def _init():
            h_acc[...] = jnp.zeros_like(h_acc)

        r = real_ref[...].astype(jnp.float32)           # (nb, cb*hw)
        f = fake_ref[...].astype(jnp.float32)
        a = alpha_ref[...]                              # (nb, 1) f32
        interp = f + a * (r - f)                        # FMA form
        h_acc[...] += jnp.dot(interp.astype(jnp.bfloat16), w1t_ref[...],
                              preferred_element_type=jnp.float32)

    # ------------- phase 1: fused backward + per-pixel sumsq ----------------
    @pl.when(p == 1)
    def _backward():
        @pl.when(c == 0)
        def _init():
            sumsq[...] = jnp.zeros_like(sumsq)

        h = h_acc[...] + b1_ref[...]                    # (nb, Hid) f32
        dh = jnp.where(h > 0.0, w2_ref[...], 0.0)       # relu'(h) * W2
        dh = dh.astype(jnp.bfloat16)

        acc = sumsq[...]
        for cc in range(cb):                            # static unroll, cb small
            g = jnp.dot(dh, w1_ref[:, cc * hw:(cc + 1) * hw],
                        preferred_element_type=jnp.float32)   # (nb, hw)
            acc = acc + g * g
        sumsq[...] = acc

        @pl.when(c == n_ctiles - 1)
        def _finalize():
            norm = jnp.sqrt(sumsq[...])                 # (nb, hw)
            pen = (norm - 1.0) ** 2
            rows = lax.broadcasted_iota(jnp.int32, (nb, 1), 0) + i * nb
            pen = jnp.where(rows < n_valid, pen, 0.0)   # mask padded batch rows
            partial = jnp.sum(pen) * (loss_weight / (n_valid * hw))
            out_ref[...] = jnp.broadcast_to(partial, out_ref.shape)


def _round_up(x, m):
    return (x + m - 1) // m * m


def gradient_penalty_loss_pallas(real, fake, alpha, w1, b1, w2,
                                 loss_weight=1.0, *, batch_block=8,
                                 channels_per_block=None):
    """real/fake: (N, C, H, W); alpha: (N,); w1: (Hid, C*H*W); b1: (Hid,);
    w2: (1, Hid).  Returns the scalar wgan-gp penalty (norm_mode='pixel')."""
    N, C, H, W = real.shape
    HW = H * W
    D = C * HW
    Hid = w1.shape[0]
    assert HW % 128 == 0, "H*W must be a multiple of 128 (see TODO above)"

    # ---- tiling -------------------------------------------------------------
    nb = _round_up(min(batch_block, _round_up(N, 8)), 8)
    n_pad = _round_up(N, nb)
    n_btiles = n_pad // nb

    if channels_per_block is None:
        cb = 1
        for d in range(C, 0, -1):
            if C % d == 0 and d * HW <= 4096:
                cb = d
                break
    else:
        cb = int(channels_per_block)
    assert C % cb == 0, "channels_per_block must divide C"
    n_ctiles = C // cb
    d_tile = cb * HW

    # ---- operand prep: bf16 HBM storage for the large arrays ----------------
    real_f = jnp.pad(real.reshape(N, D).astype(jnp.bfloat16),
                     ((0, n_pad - N), (0, 0)))
    fake_f = jnp.pad(fake.reshape(N, D).astype(jnp.bfloat16),
                     ((0, n_pad - N), (0, 0)))
    alpha2 = jnp.pad(alpha.reshape(N, 1).astype(jnp.float32),
                     ((0, n_pad - N), (0, 0)))
    w1_b = w1.astype(jnp.bfloat16)            # (Hid, D) for the backward dot
    w1t_b = w1.T.astype(jnp.bfloat16)         # (D, Hid) for the forward dot
    b1_2 = b1.reshape(1, Hid).astype(jnp.float32)
    w2_2 = w2.reshape(1, Hid).astype(jnp.float32)

    kernel = functools.partial(_gp_kernel, n_valid=N, nb=nb, cb=cb, hw=HW,
                               n_ctiles=n_ctiles,
                               loss_weight=float(loss_weight))

    # ---- VMEM budget (derived; capped so it is safe on v7x's 64 MiB) -------
    in_bytes = 2 * (2 * nb * d_tile + 2 * Hid * d_tile) * 2   # dbl-buffered bf16
    scratch_bytes = (nb * Hid + nb * HW + 8 * 128) * 4
    vmem_limit = int(min(48 * 1024 * 1024,
                         max(8 * 1024 * 1024,
                             4 * (in_bytes + scratch_bytes))))

    cost = pl.CostEstimate(
        flops=int(4 * n_pad * D * Hid + 6 * n_pad * D),
        transcendentals=int(n_pad * HW),
        bytes_accessed=int((2 * n_pad * D + 2 * Hid * D) * 2
                           + n_btiles * 8 * 128 * 4))

    out = pl.pallas_call(
        kernel,
        out_shape=jax.ShapeDtypeStruct((n_btiles, 8, 128), jnp.float32),
        grid=(n_btiles, 2, n_ctiles),
        in_specs=[
            pl.BlockSpec((nb, d_tile), lambda i, p, c: (i, c * (1 - p))),    # real
            pl.BlockSpec((nb, d_tile), lambda i, p, c: (i, c * (1 - p))),    # fake
            pl.BlockSpec((nb, 1), lambda i, p, c: (i, 0)),                   # alpha
            pl.BlockSpec((d_tile, Hid), lambda i, p, c: (c * (1 - p), 0)),   # w1t
            pl.BlockSpec((Hid, d_tile), lambda i, p, c: (0, c * p)),         # w1
            pl.BlockSpec((1, Hid), lambda i, p, c: (0, 0)),                  # b1
            pl.BlockSpec((1, Hid), lambda i, p, c: (0, 0)),                  # w2
        ],
        out_specs=pl.BlockSpec((1, 8, 128), lambda i, p, c: (i, 0, 0)),
        scratch_shapes=[
            pltpu.VMEM((nb, Hid), jnp.float32),   # h accumulator
            pltpu.VMEM((nb, HW), jnp.float32),    # per-pixel sum of squares
        ],
        compiler_params=pltpu.CompilerParams(
            dimension_semantics=("parallel", "arbitrary", "arbitrary"),
            vmem_limit_bytes=vmem_limit),
        cost_estimate=cost,
    )(real_f, fake_f, alpha2, w1t_b, w1_b, b1_2, w2_2)

    # lane-dense per-batch-tile partials already include loss_weight / (N*HW)
    return jnp.sum(out[:, 0, 0])


# ---------------- pure-JAX reference (uses jax.vjp, mirrors autograd.grad) ----
def _disc_ref(x_flat, w1, b1, w2, b2):
    h = jnp.maximum(x_flat @ w1.T + b1, 0.0)
    return h @ w2.T + b2


def gradient_penalty_loss_ref(real, fake, alpha, w1, b1, w2, b2,
                              loss_weight=1.0):
    N, C, H, W = real.shape
    a = alpha.reshape(N, 1, 1, 1)
    interp = a * real + (1.0 - a) * fake
    x = interp.reshape(N, -1)
    out, vjp = jax.vjp(lambda xi: _disc_ref(xi, w1, b1, w2, b2), x)
    (g,) = vjp(jnp.ones_like(out))
    g = g.reshape(N, C, H, W)
    norm = jnp.sqrt(jnp.sum(g * g, axis=1))            # norm over channel dim
    return jnp.mean((norm - 1.0) ** 2) * loss_weight


if __name__ == "__main__":
    def _run_case(key, N, C, H, W, Hid, loss_weight, **tile_kwargs):
        D = C * H * W
        ks = jax.random.split(key, 7)
        real = jax.random.normal(ks[0], (N, C, H, W), jnp.float32)
        fake = jax.random.normal(ks[1], (N, C, H, W), jnp.float32)
        alpha = jax.random.uniform(ks[2], (N,), jnp.float32)   # torch.rand(B,1,1,1)
        # deterministic discriminator params (2-layer MLP over flattened NCHW)
        w1 = jax.random.normal(ks[3], (Hid, D), jnp.float32) * 0.05
        b1 = jax.random.normal(ks[4], (Hid,), jnp.float32) * 0.05
        w2 = jax.random.normal(ks[5], (1, Hid), jnp.float32) * 0.05
        b2 = jax.random.normal(ks[6], (1,), jnp.float32) * 0.05  # unused by grad

        loss = gradient_penalty_loss_pallas(real, fake, alpha, w1, b1, w2,
                                            loss_weight=loss_weight,
                                            **tile_kwargs)
        loss = jax.block_until_ready(loss)
        ref = gradient_penalty_loss_ref(real, fake, alpha, w1, b1, w2, b2,
                                        loss_weight=loss_weight)
        ref = jax.block_until_ready(ref)
        # bf16 HBM storage of real/fake/w1 is a deliberate bandwidth/precision
        # trade-off (kernel is memory-bound) -> slightly loosened tolerance.
        np.testing.assert_allclose(np.asarray(loss), np.asarray(ref),
                                   rtol=2e-2, atol=2e-3)

    key = jax.random.PRNGKey(0)
    k1, k2 = jax.random.split(key)
    # case 1: module-scale shapes (N=2 padded to one 8-row batch tile),
    #         2 channel tiles exercise the accumulation phase machinery.
    _run_case(k1, N=2, C=4, H=16, W=16, Hid=32, loss_weight=1.0,
              channels_per_block=2)
    # case 2: multi-tile grid -- 2 parallel batch tiles x 4 channel tiles.
    _run_case(k2, N=16, C=4, H=16, W=16, Hid=32, loss_weight=0.5,
              channels_per_block=1)
    print("KERNEL_OK")
</pallas_src>

<mosaic_0001>
module attributes {stable_mosaic.version = 11 : i64} {
  func.func @_gp_kernel(%arg0: i32, %arg1: i32, %arg2: i32, %arg3: memref<8x512xbf16, #tpu.memory_space<vmem>>, %arg4: memref<8x512xbf16, #tpu.memory_space<vmem>>, %arg5: memref<8x1xf32, #tpu.memory_space<vmem>>, %arg6: memref<512x32xbf16, #tpu.memory_space<vmem>>, %arg7: memref<32x512xbf16, #tpu.memory_space<vmem>>, %arg8: memref<1x32xf32, #tpu.memory_space<vmem>>, %arg9: memref<1x32xf32, #tpu.memory_space<vmem>>, %arg10: memref<1x8x128xf32, #tpu.memory_space<vmem>>, %arg11: memref<8x32xf32, #tpu.memory_space<vmem>>, %arg12: memref<8x256xf32, #tpu.memory_space<vmem>>) attributes {dimension_semantics = [#tpu.dimension_semantics<parallel>, #tpu.dimension_semantics<arbitrary>, #tpu.dimension_semantics<arbitrary>], iteration_bounds = array<i64: 1, 2, 2>, scalar_prefetch = 0 : i64, scratch_operands = 2 : i64, tpu.core_type = #tpu.core_type<tc>, window_params = [{transform_indices = @transform_0, window_bounds = array<i64: 8, 512>}, {transform_indices = @transform_1, window_bounds = array<i64: 8, 512>}, {transform_indices = @transform_2, window_bounds = array<i64: 8, 1>}, {transform_indices = @transform_3, window_bounds = array<i64: 512, 32>}, {transform_indices = @transform_4, window_bounds = array<i64: 32, 512>}, {pipeline_mode = #tpu.pipeline_mode<synchronous>, transform_indices = @transform_5, window_bounds = array<i64: 1, 32>}, {pipeline_mode = #tpu.pipeline_mode<synchronous>, transform_indices = @transform_6, window_bounds = array<i64: 1, 32>}, {transform_indices = @transform_7, window_bounds = array<i64: 1, 8, 128>}]} {
    %c0_i32 = arith.constant 0 : i32
    %0 = arith.cmpi eq, %arg1, %c0_i32 : i32
    %1 = arith.extui %0 : i1 to i32
    %c0_i32_0 = arith.constant 0 : i32
    %2 = arith.cmpi ne, %1, %c0_i32_0 : i32
    scf.if %2 {
      %c0_i32_2 = arith.constant 0 : i32
      %6 = arith.cmpi eq, %arg2, %c0_i32_2 : i32
      %7 = arith.extui %6 : i1 to i32
      %c0_i32_3 = arith.constant 0 : i32
      %8 = arith.cmpi ne, %7, %c0_i32_3 : i32
      scf.if %8 {
        %cst_15 = arith.constant 0.000000e+00 : f32
        %24 = vector.broadcast %cst_15 : f32 to vector<8x32xf32>
        %c0_16 = arith.constant 0 : index
        %c0_17 = arith.constant 0 : index
        %25 = vector.load %arg11[%c0_16, %c0_17] : memref<8x32xf32, #tpu.memory_space<vmem>>, vector<8x32xf32>
        tpu.vector_store %arg11[%c0_16, %c0_17], %24 {strides = array<i32>} : memref<8x32xf32, #tpu.memory_space<vmem>>, vector<8x32xf32>,
      } else {
      }
      %c0 = arith.constant 0 : index
      %c0_4 = arith.constant 0 : index
      %9 = vector.load %arg3[%c0, %c0_4] : memref<8x512xbf16, #tpu.memory_space<vmem>>, vector<8x512xbf16>
      %10 = arith.extf %9 : vector<8x512xbf16> to vector<8x512xf32>
      %c0_5 = arith.constant 0 : index
      %c0_6 = arith.constant 0 : index
      %11 = vector.load %arg4[%c0_5, %c0_6] : memref<8x512xbf16, #tpu.memory_space<vmem>>, vector<8x512xbf16>
      %12 = arith.extf %11 : vector<8x512xbf16> to vector<8x512xf32>
      %c0_7 = arith.constant 0 : index
      %c0_8 = arith.constant 0 : index
      %13 = vector.load %arg5[%c0_7, %c0_8] : memref<8x1xf32, #tpu.memory_space<vmem>>, vector<8x1xf32>
      %14 = arith.subf %10, %12 : vector<8x512xf32>
      %15 = vector.broadcast %13 : vector<8x1xf32> to vector<8x512xf32>
      %16 = arith.mulf %15, %14 : vector<8x512xf32>
      %17 = arith.addf %12, %16 : vector<8x512xf32>
      %c0_9 = arith.constant 0 : index
      %c0_10 = arith.constant 0 : index
      %18 = vector.load %arg11[%c0_9, %c0_10] : memref<8x32xf32, #tpu.memory_space<vmem>>, vector<8x32xf32>
      %19 = arith.truncf %17 : vector<8x512xf32> to vector<8x512xbf16>
      %c0_11 = arith.constant 0 : index
      %c0_12 = arith.constant 0 : index
      %20 = vector.load %arg6[%c0_11, %c0_12] : memref<512x32xbf16, #tpu.memory_space<vmem>>, vector<512x32xbf16>
      %cst = arith.constant dense<0.000000e+00> : vector<8x32xf32>
      %21 = tpu.matmul %19, %20, %cst {dimension_numbers = #tpu.dot_dimension_numbers<[1], [0], [0], [1], [0, 0, 1, 1], [], []>} : vector<8x512xbf16>, vector<512x32xbf16>, vector<8x32xf32> -> vector<8x32xf32>
      %22 = arith.addf %18, %21 : vector<8x32xf32>
      %c0_13 = arith.constant 0 : index
      %c0_14 = arith.constant 0 : index
      %23 = vector.load %arg11[%c0_13, %c0_14] : memref<8x32xf32, #tpu.memory_space<vmem>>, vector<8x32xf32>
      tpu.vector_store %arg11[%c0_13, %c0_14], %22 {strides = array<i32>} : memref<8x32xf32, #tpu.memory_space<vmem>>, vector<8x32xf32>,
    } else {
    }
    %c1_i32 = arith.constant 1 : i32
    %3 = arith.cmpi eq, %arg1, %c1_i32 : i32
    %4 = arith.extui %3 : i1 to i32
    %c0_i32_1 = arith.constant 0 : i32
    %5 = arith.cmpi ne, %4, %c0_i32_1 : i32
    scf.if %5 {
      %c0_i32_2 = arith.constant 0 : i32
      %6 = arith.cmpi eq, %arg2, %c0_i32_2 : i32
      %7 = arith.extui %6 : i1 to i32
      %c0_i32_3 = arith.constant 0 : i32
      %8 = arith.cmpi ne, %7, %c0_i32_3 : i32
      scf.if %8 {
        %cst_21 = arith.constant 0.000000e+00 : f32
        %34 = vector.broadcast %cst_21 : f32 to vector<8x256xf32>
        %c0_22 = arith.constant 0 : index
        %c0_23 = arith.constant 0 : index
        %35 = vector.load %arg12[%c0_22, %c0_23] : memref<8x256xf32, #tpu.memory_space<vmem>>, vector<8x256xf32>
        tpu.vector_store %arg12[%c0_22, %c0_23], %34 {strides = array<i32>} : memref<8x256xf32, #tpu.memory_space<vmem>>, vector<8x256xf32>,
      } else {
      }
      %c0 = arith.constant 0 : index
      %c0_4 = arith.constant 0 : index
      %9 = vector.load %arg11[%c0, %c0_4] : memref<8x32xf32, #tpu.memory_space<vmem>>, vector<8x32xf32>
      %c0_5 = arith.constant 0 : index
      %c0_6 = arith.constant 0 : index
      %10 = vector.load %arg8[%c0_5, %c0_6] : memref<1x32xf32, #tpu.memory_space<vmem>>, vector<1x32xf32>
      %11 = vector.broadcast %10 : vector<1x32xf32> to vector<8x32xf32>
      %12 = arith.addf %9, %11 : vector<8x32xf32>
      %cst = arith.constant 0.000000e+00 : f32
      %13 = vector.broadcast %cst : f32 to vector<8x32xf32>
      %14 = arith.cmpf ogt, %12, %13 : vector<8x32xf32>
      %c0_7 = arith.constant 0 : index
      %c0_8 = arith.constant 0 : index
      %15 = vector.load %arg9[%c0_7, %c0_8] : memref<1x32xf32, #tpu.memory_space<vmem>>, vector<1x32xf32>
      %cst_9 = arith.constant 0.000000e+00 : f32
      %16 = vector.shape_cast %15 : vector<1x32xf32> to vector<1x32xf32>
      %17 = vector.broadcast %16 : vector<1x32xf32> to vector<8x32xf32>
      %18 = vector.broadcast %cst_9 : f32 to vector<8x32xf32>
      %19 = arith.select %14, %17, %18 : vector<8x32xi1>, vector<8x32xf32>
      %20 = arith.truncf %19 : vector<8x32xf32> to vector<8x32xbf16>
      %c0_10 = arith.constant 0 : index
      %c0_11 = arith.constant 0 : index
      %21 = vector.load %arg12[%c0_10, %c0_11] : memref<8x256xf32, #tpu.memory_space<vmem>>, vector<8x256xf32>
      %c0_12 = arith.constant 0 : index
      %c0_13 = arith.constant 0 : index
      %22 = vector.load %arg7[%c0_12, %c0_13] : memref<32x512xbf16, #tpu.memory_space<vmem>>, vector<32x256xbf16>
      %cst_14 = arith.constant dense<0.000000e+00> : vector<8x256xf32>
      %23 = tpu.matmul %20, %22, %cst_14 {dimension_numbers = #tpu.dot_dimension_numbers<[1], [0], [0], [1], [0, 0, 1, 1], [], []>} : vector<8x32xbf16>, vector<32x256xbf16>, vector<8x256xf32> -> vector<8x256xf32>
      %24 = arith.mulf %23, %23 : vector<8x256xf32>
      %25 = arith.addf %21, %24 : vector<8x256xf32>
      %c0_15 = arith.constant 0 : index
      %c256 = arith.constant 256 : index
      %26 = vector.load %arg7[%c0_15, %c256] : memref<32x512xbf16, #tpu.memory_space<vmem>>, vector<32x256xbf16>
      %cst_16 = arith.constant dense<0.000000e+00> : vector<8x256xf32>
      %27 = tpu.matmul %20, %26, %cst_16 {dimension_numbers = #tpu.dot_dimension_numbers<[1], [0], [0], [1], [0, 0, 1, 1], [], []>} : vector<8x32xbf16>, vector<32x256xbf16>, vector<8x256xf32> -> vector<8x256xf32>
      %28 = arith.mulf %27, %27 : vector<8x256xf32>
      %29 = arith.addf %25, %28 : vector<8x256xf32>
      %c0_17 = arith.constant 0 : index
      %c0_18 = arith.constant 0 : index
      %30 = vector.load %arg12[%c0_17, %c0_18] : memref<8x256xf32, #tpu.memory_space<vmem>>, vector<8x256xf32>
      tpu.vector_store %arg12[%c0_17, %c0_18], %29 {strides = array<i32>} : memref<8x256xf32, #tpu.memory_space<vmem>>, vector<8x256xf32>,
      %c1_i32_19 = arith.constant 1 : i32
      %31 = arith.cmpi eq, %arg2, %c1_i32_19 : i32
      %32 = arith.extui %31 : i1 to i32
      %c0_i32_20 = arith.constant 0 : i32
      %33 = arith.cmpi ne, %32, %c0_i32_20 : i32
      scf.if %33 {
        %c0_21 = arith.constant 0 : index
        %c0_22 = arith.constant 0 : index
        %34 = vector.load %arg12[%c0_21, %c0_22] : memref<8x256xf32, #tpu.memory_space<vmem>>, vector<8x256xf32>
        %35 = math.sqrt %34 : vector<8x256xf32>
        %cst_23 = arith.constant 1.000000e+00 : f32
        %36 = vector.broadcast %cst_23 : f32 to vector<8x256xf32>
        %37 = arith.subf %35, %36 : vector<8x256xf32>
        %38 = arith.mulf %37, %37 : vector<8x256xf32>
        %39 = tpu.iota {dimensions = array<i32: 0>} : vector<8x1xi32>
        %c8_i32 = arith.constant 8 : i32
        %40 = arith.muli %arg0, %c8_i32 : i32
        %41 = vector.broadcast %40 : i32 to vector<8x1xi32>
        %42 = arith.addi %39, %41 : vector<8x1xi32>
        %c2_i32 = arith.constant 2 : i32
        %43 = vector.broadcast %c2_i32 : i32 to vector<8x1xi32>
        %44 = arith.cmpi slt, %42, %43 : vector<8x1xi32>
        %cst_24 = arith.constant 0.000000e+00 : f32
        %45 = vector.shape_cast %44 : vector<8x1xi1> to vector<8x1xi1>
        %46 = vector.broadcast %45 : vector<8x1xi1> to vector<8x256xi1>
        %47 = vector.broadcast %cst_24 : f32 to vector<8x256xf32>
        %48 = arith.select %46, %38, %47 : vector<8x256xi1>, vector<8x256xf32>
        %49 = vector.shape_cast %48 : vector<8x256xf32> to vector<1x8x256xf32>
        %cst_25 = arith.constant dense<0.000000e+00> : vector<1xf32>
        %50 = vector.multi_reduction <add>, %49, %cst_25 [1, 2] : vector<1x8x256xf32> to vector<1xf32>
        %51 = vector.shape_cast %50 : vector<1xf32> to vector<1x1x1xf32>
        %52 = vector.extract %51[0, 0, 0] : f32 from vector<1x1x1xf32>
        %cst_26 = arith.constant 0.001953125 : f32
        %53 = arith.mulf %52, %cst_26 : f32
        %54 = vector.broadcast %53 : f32 to vector<1x8x128xf32>
        %c0_27 = arith.constant 0 : index
        %c0_28 = arith.constant 0 : index
        %c0_29 = arith.constant 0 : index
        %55 = vector.load %arg10[%c0_27, %c0_28, %c0_29] : memref<1x8x128xf32, #tpu.memory_space<vmem>>, vector<1x8x128xf32>
        tpu.vector_store %arg10[%c0_27, %c0_28, %c0_29], %54 {strides = array<i32>} : memref<1x8x128xf32, #tpu.memory_space<vmem>>, vector<1x8x128xf32>,
      } else {
      }
    } else {
    }
    return
  }
  func.func @transform_0(%arg0: i32, %arg1: i32, %arg2: i32) -> (i32, i32) {
    %c1_i32 = arith.constant 1 : i32
    %0 = arith.subi %c1_i32, %arg1 : i32
    %1 = arith.muli %arg2, %0 : i32
    %c0_i32 = arith.constant 0 : i32
    return %arg0, %1 : i32, i32
  }
  func.func @transform_1(%arg0: i32, %arg1: i32, %arg2: i32) -> (i32, i32) {
    %c1_i32 = arith.constant 1 : i32
    %0 = arith.subi %c1_i32, %arg1 : i32
    %1 = arith.muli %arg2, %0 : i32
    %c0_i32 = arith.constant 0 : i32
    return %arg0, %1 : i32, i32
  }
  func.func @transform_2(%arg0: i32, %arg1: i32, %arg2: i32) -> (i32, i32) {
    %c0_i32 = arith.constant 0 : i32
    %c0_i32_0 = arith.constant 0 : i32
    return %arg0, %c0_i32 : i32, i32
  }
  func.func @transform_3(%arg0: i32, %arg1: i32, %arg2: i32) -> (i32, i32) {
    %c1_i32 = arith.constant 1 : i32
    %0 = arith.subi %c1_i32, %arg1 : i32
    %1 = arith.muli %arg2, %0 : i32
    %c0_i32 = arith.constant 0 : i32
    %c0_i32_0 = arith.constant 0 : i32
    return %1, %c0_i32 : i32, i32
  }
  func.func @transform_4(%arg0: i32, %arg1: i32, %arg2: i32) -> (i32, i32) {
    %0 = arith.muli %arg2, %arg1 : i32
    %c0_i32 = arith.constant 0 : i32
    %c0_i32_0 = arith.constant 0 : i32
    return %c0_i32, %0 : i32, i32
  }
  func.func @transform_5(%arg0: i32, %arg1: i32, %arg2: i32) -> (i32, i32) {
    %c0_i32 = arith.constant 0 : i32
    %c0_i32_0 = arith.constant 0 : i32
    %c0_i32_1 = arith.constant 0 : i32
    return %c0_i32, %c0_i32_0 : i32, i32
  }
  func.func @transform_6(%arg0: i32, %arg1: i32, %arg2: i32) -> (i32, i32) {
    %c0_i32 = arith.constant 0 : i32
    %c0_i32_0 = arith.constant 0 : i32
    %c0_i32_1 = arith.constant 0 : i32
    return %c0_i32, %c0_i32_0 : i32, i32
  }
  func.func @transform_7(%arg0: i32, %arg1: i32, %arg2: i32) -> (i32, i32, i32) {
    %c0_i32 = arith.constant 0 : i32
    %c0_i32_0 = arith.constant 0 : i32
    %c0_i32_1 = arith.constant 0 : i32
    return %arg0, %c0_i32, %c0_i32_0 : i32, i32, i32
  }
}

</mosaic_0001>

<bundles_post_ra>
// kernel: tpu_custom_call.1
= control target key start
LH: loop header
LB: loop body
LE: loop exit
PB: predicated region body
PF: predicated region fallthrough
CT: control target
= control target key end

     0   :  { %s1774_s0 = inlined_call_operand.vmem [shape: bf16[8,1024], index: 0, kind: input, shape index: {}]   ;;  %s1775_s1 = inlined_call_operand.vmem [shape: bf16[8,1024], index: 1, kind: input, shape index: {}]   ;;  %s1776_s2 = inlined_call_operand.vmem [shape: f32[8,1], index: 2, kind: input, shape index: {}]   ;;  %s1777_s3 = inlined_call_operand.vmem [shape: bf16[1024,32], index: 3, kind: input, shape index: {}]   ;;  %s1778_s4 = inlined_call_operand.vmem [shape: bf16[32,1024], index: 4, kind: input, shape index: {}]   ;;  %s1779_s5 = inlined_call_operand.vmem [shape: f32[1,32], index: 5, kind: input, shape index: {}]   ;;  %s1780_s6 = inlined_call_operand.vmem [shape: f32[1,32], index: 6, kind: input, shape index: {}]   ;;  %s1781_s7 = inlined_call_operand.hbm [shape: f32[1,8,128], index: 7, kind: output, shape index: {}]  }
   0x1   :  { %1782 = sst [smem:[#allocation8_spill]] %s1778_s4 }
   0x2   :  { %12 = vsyncpa [#allocation6], 0  ;;  %s1586_s24 = smov 0   ;;  %s1588_s25 = smov 0  }
   0x3   :  { %s1590_s26 = smov 0   ;;  %s1592_s27 = smov 0  }
   0x4   :  { %s1594_s28 = smov 0   ;;  %s1596_s29 = smov 0  }
   0x5   :  { %s1598_s30 = smov 0  }
   0x6 LB: > { %s30_s9 = sadd.s32 1, %s1531_s28  ;;  %s33_s10 = sadd.s32 1, %s1535_s29  ;;  %s1539_s30 = sphi %s1598_s30, %s18_s30   ;;  %s1535_s29 = sphi %s1596_s29, %s1791_s29   ;;  %s1531_s28 = sphi %s1594_s28, %s1790_s28   ;;  %s1527_s27 = sphi %s1592_s27, %s1789_s27   ;;  %s1523_s26 = sphi %s1590_s26, %s1788_s26   ;;  %s1519_s25 = sphi %s1588_s25, %s1787_s25   ;;  %s1515_s24 = sphi %s1586_s24, %s1786_s24  }
   0x7   : > { %p31_p0 = scmp.ge.s32.totalorder %s30_s9, 2  ;;  %p173_p1 = scmp.ne.s32.totalorder %s1519_s25, %s1515_s24 }
   0x8   : > { %p174_p2 = scmp.eq.s32.totalorder %s1539_s30, 0  ;;  %s161_s11 = smul.u32 %s1531_s28, %s1535_s29 }
   0x9   : > { %s1793_s9 = smov (%p31_p0, %s30_s9), 0  ;;  %s1795_s10 = smov (!%p31_p0, %s33_s10), %s1535_s29 }
   0xa   : > { %p35_p3 = scmp.ge.s32.totalorder %s1795_s10, 2  ;;  %p175_p4 = por %p174_p2, %p173_p1 }
   0xb   : > { %s166_s14 = sadd.s32 1, %s1519_s25  ;;  %p1225_p6 = scmp.ge.s32.totalorder %s1539_s30, 4 }
   0xc   : > { %s1797_s10 = smov (%p35_p3, %s1795_s10), 0 }
   0xd   : > { %s162_s12 = smul.u32 %s1797_s10, %s1793_s9 }
   0xe   : > { %280 = sbr.rel (%p1225_p6) target bundleno = 35 (0x23), region = 28 }
   0xf   : > { %s163_s13 = ssub.s32 %s161_s11, %s162_s12 }
  0x10   : > { %p164_p5 = scmp.eq.s32.totalorder %s163_s13, 0 }
  0x12   : > { %s1638_s15 = scalar_select %p164_p5, %s1519_s25, %s166_s14  }
  0x15   : > { %330 = sbr.rel (!%p175_p4) target bundleno = 35 (0x23), region = 44  ;;  %s332_s16 = sand.u32 (%p175_p4), 1, %s1519_s25  }
  0x16   : > { %s1292_s17 = sshll.u32 (%p175_p4), %s161_s11, 4  ;;  %s1226_s18 = sshll.u32 (%p175_p4), %s332_s16, 6 }
  0x17   : > { %s1783_s4 = sld [smem:[#allocation8_spill]] (%p175_p4)  ;;  %s334_s22 = scalar_lea.vmem (%p175_p4), [#allocation4], %s1226_s18 }
  0x1d   : > { %s338_s21 = scalar_lea.vmem %s1783_s4, %s1292_s17 }
  0x1e   : > { %v351_v0 = vld [vmem:[%s338_s21] sm:$0xff]  ;;  %v353_v1 = vld [vmem:[%s338_s21 + $0x8] sm:$0xff] }
  0x1f   : > { %v355_v2 = vld [vmem:[%s338_s21 + $0x20] sm:$0xff]  ;;  %352 = vst [vmem:[%s334_s22] sm:$0xff] %v351_v0  ;;  %354 = vst [vmem:[%s334_s22 + $0x8] sm:$0xff] %v353_v1  ;;  %v357_v3 = vld [vmem:[%s338_s21 + $0x28] sm:$0xff] }
  0x20   : > { %356 = vst [vmem:[%s334_s22 + $0x10] sm:$0xff] %v355_v2  ;;  %v359_v4 = vld [vmem:[%s338_s21 + $0x40] sm:$0xff]  ;;  %v361_v5 = vld [vmem:[%s338_s21 + $0x48] sm:$0xff]  ;;  %358 = vst [vmem:[%s334_s22 + $0x18] sm:$0xff] %v357_v3 }
  0x21   : > { %360 = vst [vmem:[%s334_s22 + $0x20] sm:$0xff] %v359_v4  ;;  %362 = vst [vmem:[%s334_s22 + $0x28] sm:$0xff] %v361_v5  ;;  %v363_v6 = vld [vmem:[%s338_s21 + $0x60] sm:$0xff]  ;;  %v365_v7 = vld [vmem:[%s338_s21 + $0x68] sm:$0xff] }
  0x22   : > { %364 = vst [vmem:[%s334_s22 + $0x30] sm:$0xff] %v363_v6  ;;  %366 = vst [vmem:[%s334_s22 + $0x38] sm:$0xff] %v365_v7 }
  0x23 PF: > { %p1229_p7 = scmp.ge.s32.totalorder %s1539_s30, 1  ;;  %p371_p8 = scmp.lt.s32.totalorder %s1539_s30, 5 }
  0x25   : > { %p372_p9 = pnand %p1229_p7, %p371_p8 }
  0x26   : > { %s378_s23 = sand.u32 (!%p372_p9), 1, %s1515_s24   ;;  %s437_s11 = ssub.s32 (!%p372_p9), 1, %s1527_s27 }
  0x27   : > { %375 = sbr.rel (%p372_p9) target bundleno = 929 (0x3a1), region = 67  ;;  %s1230_s12 = sshll.u32 (!%p372_p9), %s378_s23, 6 }
  0x28   : > { %s438_s13 = smul.u32 (!%p372_p9), %s1523_s26, %s437_s11  ;;  %s1665_s4 = scalar_lea.vmem (!%p372_p9), [#allocation4], %s1230_s12 }
  0x29   : > { %p1237_p12 = scmp.ne.s32.totalorder (!%p372_p9), %s1527_s27, 0 }
  0x2a   : > { %s1231_s14 = sshll.u32 (!%p372_p9), %s438_s13, 2  ;;  %s1235_s16 = sshll.u32 (!%p372_p9), %s438_s13, 6 }
  0x2b   : > { %p442_p10 = scmp.lt.s32.totalorder (!%p372_p9), %s1231_s14, 7  ;;  %p472_p11 = scmp.lt.s32.totalorder (!%p372_p9), %s1235_s16, 127 }
  0x2e   : > { %s1799_s14 = smov (!%p442_p10, %s1231_s14), 7  ;;  %s1801_s16 = smov (!%p472_p11, %s1235_s16), 127 }
  0x2f   : > { %s1232_s17 = sshll.u32 %s1799_s14, 2  ;;  %s1236_s24 = sshll.u32 %s1801_s16, 2 }
  0x30   : > { %s1653_s20 = scalar_lea.vmem %s1774_s0, %s1232_s17  ;;  %s1658_s8 = scalar_lea.vmem %s1775_s1, %s1232_s17 }
  0x31   : > { %s1663_s13 = scalar_lea.vmem %s1777_s3, %s1236_s24  ;;  %485 = sbr.rel (%p1237_p12) target bundleno = 420 (0x1a4), region = 75 }
  0x32   : > { %p1238_p13 = scmp.ne.s32.totalorder (!%p1237_p12), %s1523_s26, 0 }
  0x38   : > { %489 = sbr.rel (%p1238_p13) target bundleno = 63 (0x3f), region = 79  ;;  %vm490_vm0 = vcmask (!%p1238_p13), 261120   ;;  %v1541_v8 = vmov (!%p1238_p13), 0.0  }
  0x39   : > { %491 = vst.msk [vmem:[#allocation2] sm:$0xff] (!%p1238_p13), %vm490_vm0, %v1541_v8 }
  0x3f PF: > { %v504_v9 = vld [vmem:[%s1776_s2] sm:$0xff]  ;;  %v1542_v10 = vmov 0   ;;  %v1411_v15 = vld [vmem:[%s1663_s13 + $0x48] sm:$0xff]   ;;  %v1415_v19 = vld [vmem:[%s1663_s13 + $0x50] sm:$0xff]   ;;  %vm864_vm1 = vcmask 261120  }
  0x40   : > { %1406 = vset.pattern.permute.xlu0 %v1542_v10  ;;  %v1407_v11 = vld [vmem:[%s1663_s13 + $0x40] sm:$0xff]   ;;  %v1412_v16 = vld [vmem:[%s1663_s13 + $0xc8] sm:$0xff]   ;;  %v1416_v20 = vld [vmem:[%s1663_s13 + $0xd0] sm:$0xff]  }
  0x41   : > { %511 = vperm.xlu0 %1406, %v504_v9   ;;  %v1408_v12 = vld [vmem:[%s1663_s13 + $0xc0] sm:$0xff]   ;;  %1293 = vmatprep.subr.bf16.mxu0 %v1407_v11  ;;  %v1413_v17 = vld [vmem:[%s1663_s13 + $0x8] sm:$0xff]   ;;  %v1417_v21 = vld [vmem:[%s1663_s13 + $0x10] sm:$0xff]  }
  0x42   : > { %v1409_v13 = vld [vmem:[%s1663_s13] sm:$0xff]   ;;  %1315 = vmatprep.subr.bf16.mxu1 %v1408_v12  ;;  %v1414_v18 = vld [vmem:[%s1663_s13 + $0x88] sm:$0xff]   ;;  %v1418_v22 = vld [vmem:[%s1663_s13 + $0x90] sm:$0xff]  }
  0x43   : > { %v1410_v14 = vld [vmem:[%s1663_s13 + $0x80] sm:$0xff]   ;;  %1294 = vmatpush3.bf16.msra.mxu0 %v1409_v13  ;;  %v1419_v23 = vld [vmem:[%s1663_s13 + $0x58] sm:$0xff]   ;;  %v1427_v31 = vld [vmem:[%s1663_s13 + $0x68] sm:$0xff]  }
  0x44   : > { %1316 = vmatpush3.bf16.msra.mxu1 %v1410_v14  ;;  %1295 = vmatprep.subr.bf16.mxu0 %v1411_v15  ;;  %v1420_v24 = vld [vmem:[%s1663_s13 + $0xd8] sm:$0xff]   ;;  %v1423_v27 = vld [vmem:[%s1663_s13 + $0x60] sm:$0xff]   ;;  %v1428_v32 = vld [vmem:[%s1663_s13 + $0xe8] sm:$0xff]  }
  0x45   : > { %1317 = vmatprep.subr.bf16.mxu1 %v1412_v16  ;;  %v1421_v25 = vld [vmem:[%s1663_s13 + $0x18] sm:$0xff]   ;;  %v1424_v28 = vld [vmem:[%s1663_s13 + $0xe0] sm:$0xff]   ;;  %v1429_v33 = vld [vmem:[%s1663_s13 + $0x28] sm:$0xff]  }
  0x46   : > { %v1422_v26 = vld [vmem:[%s1663_s13 + $0x98] sm:$0xff]   ;;  %v1425_v29 = vld [vmem:[%s1663_s13 + $0x20] sm:$0xff]   ;;  %v1430_v34 = vld [vmem:[%s1663_s13 + $0xa8] sm:$0xff]  }
  0x47   : > { %1296 = vmatpush3.bf16.msra.mxu0 %v1413_v17  ;;  %v1426_v30 = vld [vmem:[%s1663_s13 + $0xa0] sm:$0xff]   ;;  %v1431_v35 = vld [vmem:[%s1663_s13 + $0x70] sm:$0xff]   ;;  %v1435_v39 = vld [vmem:[%s1663_s13 + $0x78] sm:$0xff]  }
  0x48   : > { %1318 = vmatpush3.bf16.msra.mxu1 %v1414_v18  ;;  %1297 = vmatprep.subr.bf16.mxu0 %v1415_v19  ;;  %v1432_v36 = vld [vmem:[%s1663_s13 + $0xf0] sm:$0xff]   ;;  %v1436_v40 = vld [vmem:[%s1663_s13 + $0xf8] sm:$0xff]   ;;  %v492_v43 = vld [vmem:[%s1653_s20] sm:$0xff] }
  0x49   : > { %1319 = vmatprep.subr.bf16.mxu1 %v1416_v20  ;;  %v1433_v37 = vld [vmem:[%s1663_s13 + $0x30] sm:$0xff]   ;;  %v1437_v41 = vld [vmem:[%s1663_s13 + $0x38] sm:$0xff]   ;;  %v493_v44 = vld [vmem:[%s1653_s20 + $0x8] sm:$0xff]  ;;  %v494_v47 = vunpack.c.l.bf16 %v492_v43  ;;  %v495_v49 = vunpack.c.h.bf16 %v492_v43 }
  0x4a   : > { %v1434_v38 = vld [vmem:[%s1663_s13 + $0xb0] sm:$0xff]   ;;  %v1438_v42 = vld [vmem:[%s1663_s13 + $0xb8] sm:$0xff]   ;;  %v498_v45 = vld [vmem:[%s1658_s8] sm:$0xff]  ;;  %v496_v48 = vunpack.c.l.bf16 %v493_v44  ;;  %v497_v50 = vunpack.c.h.bf16 %v493_v44 }
  0x4b   : > { %1298 = vmatpush3.bf16.msra.mxu0 %v1417_v21  ;;  %v499_v46 = vld [vmem:[%s1658_s8 + $0x8] sm:$0xff]  ;;  %v500_v51 = vunpack.c.l.bf16 %v498_v45  ;;  %v501_v53 = vunpack.c.h.bf16 %v498_v45  ;;  %v522_v16 = vld [vmem:[#allocation2] sm:$0xff] }
  0x4c   : > { %1320 = vmatpush3.bf16.msra.mxu1 %v1418_v22  ;;  %1299 = vmatprep.subr.bf16.mxu0 %v1419_v23  ;;  %v502_v52 = vunpack.c.l.bf16 %v499_v46  ;;  %v503_v54 = vunpack.c.h.bf16 %v499_v46 }
  0x4d   : > { %1321 = vmatprep.subr.bf16.mxu1 %v1420_v24  ;;  %v505_v55 = vsub.f32 %v494_v47, %v500_v51  ;;  %v506_v57 = vsub.f32 %v495_v49, %v501_v53 }
  0x4e   : > { %v507_v56 = vsub.f32 %v496_v48, %v502_v52  ;;  %v508_v58 = vsub.f32 %v497_v50, %v503_v54 }
  0x4f   : > { %1300 = vmatpush3.bf16.msra.mxu0 %v1421_v25 }
  0x50   : > { %1322 = vmatpush3.bf16.msra.mxu1 %v1422_v26  ;;  %1301 = vmatprep.subr.bf16.mxu0 %v1423_v27 }
  0x51   : > { %1323 = vmatprep.subr.bf16.mxu1 %v1424_v28 }
  0x53   : > { %1302 = vmatpush3.bf16.msra.mxu0 %v1425_v29 }
  0x54   : > { %1324 = vmatpush3.bf16.msra.mxu1 %v1426_v30  ;;  %1303 = vmatprep.subr.bf16.mxu0 %v1427_v31 }
  0x55   : > { %1325 = vmatprep.subr.bf16.mxu1 %v1428_v32 }
  0x57   : > { %1304 = vmatpush3.bf16.msra.mxu0 %v1429_v33 }
  0x58   : > { %1326 = vmatpush3.bf16.msra.mxu1 %v1430_v34  ;;  %1305 = vmatprep.subr.bf16.mxu0 %v1431_v35 }
  0x59   : > { %1327 = vmatprep.subr.bf16.mxu1 %v1432_v36 }
  0x5b   : > { %1306 = vmatpush3.bf16.msra.mxu0 %v1433_v37 }
  0x5c   : > { %1328 = vmatpush3.bf16.msra.mxu1 %v1434_v38  ;;  %1307 = vmatprep.subr.bf16.mxu0 %v1435_v39 }
  0x5d   : > { %1329 = vmatprep.subr.bf16.mxu1 %v1436_v40 }
  0x5f   : > { %1308 = vmatpush3.bf16.msra.mxu0 %v1437_v41 }
  0x60   : > { %1330 = vmatpush3.bf16.msra.mxu1 %v1438_v42 }
  0xc0   : > { %v512_v59 = vpop.permute.xlu0 %511 }
  0xc1   : > { %v514_v60 = vmul.f32 %v512_v59, %v505_v55  ;;  %v516_v61 = vmul.f32 %v512_v59, %v507_v56  ;;  %v515_v62 = vmul.f32 %v512_v59, %v506_v57  ;;  %v517_v63 = vmul.f32 %v512_v59, %v508_v58 }
  0xc3   : > { %v519_v0 = vadd.f32 %v515_v62, %v501_v53  ;;  %v521_v1 = vadd.f32 %v517_v63, %v503_v54  ;;  %v518_v2 = vadd.f32 %v514_v60, %v500_v51  ;;  %v520_v3 = vadd.f32 %v516_v61, %v502_v52 }
  0xc5   : > { %v524_v4 = vpack.c.bf16 %v519_v0, %v519_v0  ;;  %v526_v5 = vpack.c.bf16 %v521_v1, %v521_v1  ;;  %v523_v6 = vpack.c.bf16 %v518_v2, %v518_v2  ;;  %v525_v7 = vpack.c.bf16 %v520_v3, %v520_v3 }
  0xc7   : > { %815 = vmatprep.mubr.bf16.mxu0 %v524_v4  ;;  %855 = vmatprep.mubr.bf16.mxu1 %v526_v5 }
  0xc8   : > { %816 = vmatmul.mubr.bf16.vlgmr.msra.gmra.mrb[0].mxu0 %v523_v6  ;;  %856 = vmatmul.mubr.bf16.vlgmr.msra.gmra.mrb[0].mxu1 %v525_v7 }
 0x19b   : > { %v1309_v8 = vpop.f32.mrb[0].mxu0  ;;  %v1331_v9 = vpop.f32.mrb[0].mxu1 }
 0x19c   : > { %v1310_v10 = vpop.f32.mrb[1].mxu0  ;;  %v1332_v11 = vpop.f32.mrb[1].mxu1 }
 0x19d   : > { %v1311_v12 = vadd.f32 %v1310_v10, %v1309_v8  ;;  %v1333_v13 = vadd.f32 %v1332_v11, %v1331_v9  ;;  %v1312_v14 = vpop.f32.mrb[2].mxu0  ;;  %v1334_v15 = vpop.f32.mrb[2].mxu1 }
 0x19e   : > { %v1313_v17 = vpop.f32.mrb[3].mxu0  ;;  %v1335_v18 = vpop.f32.mrb[3].mxu1 }
 0x19f   : > { %v858_v19 = vadd.f32 %v1333_v13, %v1311_v12 }
 0x1a1   : > { %v863_v20 = vadd.f32 %v858_v19, %v522_v16 }
 0x1a3   : > { %865 = vst.msk [vmem:[#allocation2] sm:$0xff] %vm864_vm1, %v863_v20 }
 0x1a4 PF: > { %p1271_p0 = scmp.ne.s32.totalorder %s1527_s27, 1 }
 0x1a5   : > { %p1272_p1 = scmp.ne.s32.totalorder (!%p1271_p0), %s1523_s26, 0 }
 0x1a6   : > { %869 = sbr.rel (%p1271_p0) target bundleno = 904 (0x388), region = 83 }
 0x1ad   : > { %873 = sbr.rel (%p1272_p1) target bundleno = 436 (0x1b4), region = 87  ;;  %v1543_v21 = vmov (!%p1272_p1), 0.0  }
 0x1ae   : > { %874 = vst [vmem:[#allocation3] sm:$0xff] (!%p1272_p1), %v1543_v21  ;;  %875 = vst [vmem:[#allocation3 + $0x8] sm:$0xff] (!%p1272_p1), %v1543_v21 }
 0x1b4 PF: > { %v1439_v22 = vld [vmem:[%s1665_s4 + $0x4] ss:$16 sps:$4 sm:$0xff]   ;;  %v1441_v23 = vld [vmem:[%s1665_s4 + $0xc] ss:$16 sps:$4 sm:$0xff]   ;;  %v1544_v24 = vmov 0   ;;  %vm921_vm3 = vcmask 261120  }
 0x1b5   : > { %957 = vmatprep.mubr.bf16.mxu0 %v1544_v24  ;;  %1026 = vmatprep.mubr.bf16.mxu1 %v1544_v24  ;;  %v1443_v25 = vld [vmem:[%s1665_s4] ss:$16 sps:$4 sm:$0xff]   ;;  %v1444_v26 = vld [vmem:[%s1665_s4 + $0x8] ss:$16 sps:$4 sm:$0xff]   ;;  %v1445_v27 = vld [vmem:[%s1665_s4 + $0x24] ss:$16 sps:$4 sm:$0xff]  }
 0x1b6   : > { %925 = vmatprep.subr.bf16.mxu0 %v1439_v22  ;;  %994 = vmatprep.subr.bf16.mxu1 %v1441_v23  ;;  %v1447_v28 = vld [vmem:[%s1665_s4 + $0x2c] ss:$16 sps:$4 sm:$0xff]   ;;  %v1449_v29 = vld [vmem:[%s1665_s4 + $0x20] ss:$16 sps:$4 sm:$0xff]   ;;  %v1450_v30 = vld [vmem:[%s1665_s4 + $0x28] ss:$16 sps:$4 sm:$0xff]  }
 0x1b7   : > { %926 = vmatpush1.bf16.msra.mxu0 %v1443_v25  ;;  %995 = vmatpush1.bf16.msra.mxu1 %v1444_v26  ;;  %v876_v31 = vld [vmem:[#allocation2] sm:$0xff]  ;;  %v895_v37 = vld [vmem:[#allocation3] sm:$0xff]  ;;  %v896_v42 = vld [vmem:[#allocation3 + $0x8] sm:$0xff]  ;;  %p1285_p2 = scmp.ne.s32.totalorder %s1523_s26, 1 }
 0x1b8   : > { %927 = vmatprep.subr.bf16.mxu0 %v1445_v27  ;;  %v1273_v32 = vld [vmem:[%s1779_s5] ss:$0 sm:$0xff]  ;;  %996 = vmatprep.subr.bf16.mxu1 %v1447_v28  ;;  %v1065_v57 = vlaneseq (!%p1285_p2) }
 0x1b9   : > { %v884_v33 = vadd.f32 %v1273_v32, %v876_v31  ;;  %v1274_v34 = vld [vmem:[%s1780_s6] ss:$0 sm:$0xff] }
 0x1ba   : > { %v1066_v0 = vshrl.u32 (!%p1285_p2), %v1065_v57, 7 }
 0x1bb   : > { %928 = vmatpush1.bf16.msra.mxu0 %v1449_v29  ;;  %997 = vmatpush1.bf16.msra.mxu1 %v1450_v30  ;;  %vm885_vm2 = vcmp.gt.f32.partialorder %v884_v33, 0.0 }
 0x1bc   : > { %v893_v35 = vsel %vm885_vm2, %v1274_v34, 0.0  ;;  %vm1070_vm8 = vcmp.lt.s32.totalorder (!%p1285_p2), %v1066_v0, 2 }
 0x1bd   : > { %v894_v36 = vpack.c.bf16 %v893_v35, %v893_v35 }
 0x1bf   : > { %1279 = vmatmul.mubr.msk.bf16.vlgmr.msra.gmra.mrb[0].mxu0 %vm921_vm3, %v894_v36  ;;  %1284 = vmatmul.mubr.msk.bf16.vlgmr.msra.gmra.mrb[0].mxu1 %vm921_vm3, %v894_v36 }
 0x292   : > { %v959_v38 = vpop.f32.mrb[0].mxu0  ;;  %v1028_v39 = vpop.f32.mrb[0].mxu1 }
 0x293   : > { %v966_v40 = vmul.f32 %v959_v38, %v959_v38  ;;  %v1035_v41 = vmul.f32 %v1028_v39, %v1028_v39  ;;  %v961_v43 = vpop.f32.mrb[1].mxu0  ;;  %v1030_v44 = vpop.f32.mrb[1].mxu1 }
 0x294   : > { %v967_v45 = vmul.f32 %v961_v43, %v961_v43  ;;  %v1036_v46 = vmul.f32 %v1030_v44, %v1030_v44  ;;  %v963_v47 = vpop.f32.mrb[2].mxu0  ;;  %v1032_v48 = vpop.f32.mrb[2].mxu1  ;;  %1044 = sbr.rel (%p1285_p2) target bundleno = 904 (0x388), region = 91 }
 0x295   : > { %v968_v49 = vadd.f32 %v966_v40, %v895_v37  ;;  %v964_v50 = vpop.f32.mrb[3].mxu0  ;;  %v1033_v51 = vpop.f32.mrb[3].mxu1 }
 0x296   : > { %v969_v52 = vadd.f32 %v967_v45, %v896_v42 }
 0x297   : > { %v1037_v53 = vadd.f32 %v1035_v41, %v968_v49 }
 0x298   : > { %v1038_v54 = vadd.f32 %v1036_v46, %v969_v52 }
 0x299   : > { %1039 = vst [vmem:[#allocation3] sm:$0xff] %v1037_v53 }
 0x29a   : > { %1040 = vst [vmem:[#allocation3 + $0x8] sm:$0xff] %v1038_v54 }
 0x2a0   : > { %v1045_v55 = vld [vmem:[#allocation3] sm:$0xff] }
 0x2a1   : > { %v1046_v56 = vld [vmem:[#allocation3 + $0x8] sm:$0xff]  ;;  %1451 = vrsqrt.f32 %v1045_v55  ;;  %vm1049_vm4 = vcmp.eq.f32.partialorder %v1045_v55, inf  ;;  %v1052_v59 = vand.u32 2147483648, %v1045_v55  ;;  %vm1051_vm5 = vcmp.eq.f32.partialorder %v1045_v55, 0.0 }
 0x2a2   : > { %1453 = vrsqrt.f32 %v1046_v56  ;;  %vm1056_vm6 = vcmp.eq.f32.partialorder %v1046_v56, inf  ;;  %v1059_v62 = vand.u32 2147483648, %v1046_v56  ;;  %vm1058_vm7 = vcmp.eq.f32.partialorder %v1046_v56, 0.0 }
 0x2ab   : > { %v1452_v58 = vpop.eup %1451 }
 0x2ac   : > { %v1454_v60 = vpop.eup %1453  ;;  %v1048_v61 = vmul.f32 %v1452_v58, %v1045_v55 }
 0x2ad   : > { %v1055_v63 = vmul.f32 %v1454_v60, %v1046_v56 }
 0x2ae   : > { %v1050_v1 = vsel %vm1049_vm4, %v1045_v55, %v1048_v61 }
 0x2af   : > { %v1053_v2 = vsel %vm1051_vm5, %v1052_v59, %v1050_v1  ;;  %v1057_v3 = vsel %vm1056_vm6, %v1046_v56, %v1055_v63 }
 0x2b0   : > { %v1060_v4 = vsel %vm1058_vm7, %v1059_v62, %v1057_v3  ;;  %v1286_v5 = vadd.f32 -1.0, %v1053_v2 }
 0x2b1   : > { %v1287_v6 = vadd.f32 -1.0, %v1060_v4 }
 0x2b2   : > { %v1063_v7 = vmul.f32 %v1286_v5, %v1286_v5 }
 0x2b3   : > { %v1064_v8 = vmul.f32 %v1287_v6, %v1287_v6 }
 0x2b4   : > { %v1073_v9 = vsel %vm1070_vm8, %v1063_v7, 0.0 }
 0x2b5   : > { %v1074_v10 = vsel %vm1070_vm8, %v1064_v8, 0.0 }
 0x2b6   : > { %v1075_v11 = vadd.f32 %v1074_v10, %v1073_v9 }
 0x2b8   : > { %1076 = vadd.xlane.f32.xlu0 %v1075_v11 }
 0x345   : > { %v1077_v12 = vpop.xlane.xlu0 %1076 }
 0x346   : > { %v1078_v13 = vrot.slane %v1077_v12, 4 }
 0x348   : > { %v1079_v14 = vadd.f32 %v1078_v13, %v1077_v12 }
 0x34a   : > { %v1080_v15 = vrot.slane %v1079_v14, 2 }
 0x34c   : > { %v1081_v16 = vadd.f32 %v1080_v15, %v1079_v14 }
 0x34e   : > { %v1082_v17 = vrot.slane %v1081_v16, 1 }
 0x350   : > { %v1083_v18 = vadd.f32 %v1082_v17, %v1081_v16 }
 0x352   : > { %1337 = vpush %v1083_v18 }
 0x383   : > { %s1338_s4 = spop %1337 }
 0x384   : > { %s1085_s26 = smul.f32 0.001953125, %s1338_s4 }
 0x386   : > { %v1086_v19 = vstv %s1085_s26 }
 0x387   : > { %1087 = vst [vmem:[#allocation5] sm:$0xff] %v1086_v19 }
 0x388 PF: > { %s1784_s18 = sadd.s32 4294967295, %s1539_s30   ;;  %s1545_s20 = smov [#allocation5]  }
 0x389   : > { %p1727_p3 = scmp.eq.s32.totalorder %s1784_s18, 3  ;;  %s1097_s21 = sshll.u32 %s1545_s20, 4  ;;  %s1098_s21 = int_to_ptr.vmem [resolvable:$true] %s1097_s21 }
 0x38a   : > { %s1455_s22 = scalar_lea.vmem %s1098_s21, 128  ;;  %p1462_p7 = scmp.lt.s32.totalorder %s1098_s21, %s1098_s21 }
 0x38b   : > { %p1456_p4 = scmp.ne.s32.totalorder %s1098_s21, %s1455_s22  ;;  %p1463_p8 = scmp.lt.s32.totalorder %s1455_s22, %s1455_s22 }
 0x38d   : > { %p1457_p5 = pnand %p1456_p4, %p1727_p3  ;;  %p1464_p9 = por %p1463_p8, %p1462_p7 }
 0x38f   : > { %p1458_p6 = pneg %p1457_p5 }
 0x391   : > { %p1465_p10 = pnand %p1464_p9, %p1458_p6 }
 0x393   : > { %1468 = shalt.err (!%p1465_p10)
}
 0x394   : > { %s1469_s11 = scalar_lea.hbm %s1781_s7, 128 }
 0x395   : > { %p1470_p11 = scmp.ne.s32.totalorder %s1781_s7, %s1469_s11  ;;  %p1475_p0 = scmp.lt.u32.totalorder %s1469_s11, %s1781_s7 }
 0x397   : > { %p1471_p12 = pnand %p1470_p11, %p1727_p3 }
 0x399   : > { %p1472_p13 = pneg %p1471_p12 }
 0x39b   : > { %p1477_p1 = pnand %p1475_p0, %p1472_p13 }
 0x39d   : > { %1480 = shalt.err (!%p1477_p1)
}
 0x39e   : > { %1340 = dma.vmem_to_hbm [thread:$0]  (%p1727_p3), %s1098_s21, 128, %s1781_s7, [#allocation6]  }
 0x39f   : > { %1510 = dma.done.wait (%p1727_p3), [#allocation6], 128  }
 0x3a0   : > { %1512 = vsyncadd (%p1727_p3), [#allocation6], 4294967168 }
 0x3a1 PF: > { %s18_s30 = sadd.s32 1, %s1539_s30   ;;  %s1786_s24 = smov %s1519_s25 }
 0x3a2   : > { %p15_p2 = scmp.ge.s32.totalorder %s18_s30, 6   ;;  %s1787_s25 = smov %s1638_s15 }
 0x3a3   : > { %s1788_s26 = smov %s1531_s28  ;;  %s1789_s27 = smov %s1535_s29 }
 0x3a4   : > { %s1790_s28 = smov %s1793_s9  ;;  %s1791_s29 = smov %s1797_s10 }
 0x3a5   :  { %17 = sbr.rel (!%p15_p2) target bundleno = 6 (0x6), region = 136 }
 0x3ac   :  { %1110 = vsyncpa [#allocation6], 1 }
 0x3ad   :  { %1112 = vsyncpa [#allocation6 + $0x1], 1 }

</bundles_post_ra>
